<compile_context>
chip_gen: v5e
topology: v5e:2x2
jax: 0.10.0
libtpu: 0.0.40
codegen_flags: <defaults>
</compile_context>

<pallas_src>
import jax
import jax.numpy as jnp
import numpy as np
from jax.experimental import pallas as pl
from jax.experimental.pallas import tpu as pltpu


# ---------------------------------------------------------------------------
# Kernel
# ---------------------------------------------------------------------------
def ffn_kernel(x_ref, w_ref, b2_ref, y_ref, h_ref):
    # x_ref : (TILE_N, 1)   batch on sublanes
    # w_ref : (3, H)        rows: [w1, b1, w2], H on lanes (resident in VMEM)
    # b2_ref: (1,)          fc2 bias, SMEM scalar
    # y_ref : (TILE_N, 1)
    # h_ref : (TILE_N, H)
    x = x_ref[...]                       # (TILE_N, 1)
    w1 = w_ref[0:1, :]                   # (1, H)
    b1 = w_ref[1:2, :]                   # (1, H)
    w2 = w_ref[2:3, :]                   # (1, H)

    # fc1 + relu: pure VPU broadcast, (TILE_N,1)*(1,H) -> (TILE_N, H)
    h = jnp.maximum(x * w1 + b1, 0.0)
    h_ref[...] = h

    # fc2: VPU multiply + XLU lane reduce, f32 accumulate
    y_ref[...] = jnp.sum(h * w2, axis=-1, keepdims=True) + b2_ref[0]


# ---------------------------------------------------------------------------
# Static (trace-time) tile planning
# ---------------------------------------------------------------------------
_VMEM_LIMIT_BYTES = 32 * 1024 * 1024           # explicit; > v5e's 16 MiB default,
                                               # well inside v7x's 64 MiB physical
_VMEM_TILE_BUDGET = (3 * _VMEM_LIMIT_BYTES) // 4   # use <=75% for pipeline headroom
_MAX_TILE_N = 8192
_MIN_SPLIT_N = 2048    # below this, one grid step beats megacore sharding overhead


def _round_up(v, m):
    return ((v + m - 1) // m) * m


def _plan_tiles(n, h):
    """Pick (tile_n, n_pad).  Pure Python on static shapes."""
    h_lanes = _round_up(max(h, 1), 128)          # VMEM lane footprint of h block
    n8 = _round_up(max(n, 1), 8)
    # double-buffered VMEM bytes per tile row: h block + x block + y block
    bytes_per_row = 2 * (h_lanes + 2 * 128) * 4
    tile_cap = max(8, (_VMEM_TILE_BUDGET // bytes_per_row) // 8 * 8)
    tile_cap = min(tile_cap, _MAX_TILE_N)
    if n8 < _MIN_SPLIT_N:
        tile_n = min(n8, tile_cap)
    else:
        steps = max(2, -(-n8 // tile_cap))       # ceil div
        if steps % 2:
            steps += 1                           # even step count -> balanced on 2 TCs
        tile_n = min(tile_cap, _round_up(-(-n8 // steps), 8))
    n_pad = _round_up(n8, tile_n)
    return tile_n, n_pad


# ---------------------------------------------------------------------------
# Forward pass (jit this; params packed once via prepare_params)
# ---------------------------------------------------------------------------
def prepare_params(w1, b1, w2, b2):
    """Hoisted out of the per-call path: pack fc1/fc2 params once.

    w1: (H, 1), b1: (H,), w2: (1, H), b2: (1,)   (PyTorch nn.Linear layouts)
    returns wpack (3, H) = [w1; b1; w2] and b2 (1,) f32.
    """
    H = w1.shape[0]
    wpack = jnp.concatenate(
        [w1.reshape(1, H).astype(jnp.float32),
         b1.reshape(1, H).astype(jnp.float32),
         w2.reshape(1, H).astype(jnp.float32)], axis=0)
    return wpack, b2.reshape((1,)).astype(jnp.float32)


def ffn_forward(x, wpack, b2):
    """x: (N, 1) f32, wpack: (3, H), b2: (1,).  Returns (y_pred (N,1), h (N,H))."""
    N = x.shape[0]
    H = wpack.shape[1]
    tile_n, n_pad = _plan_tiles(N, H)

    xp = x.astype(jnp.float32)
    if n_pad != N:
        # Zero-pad batch rows (junk rows are computed but sliced off below).
        xp = jnp.pad(xp, ((0, n_pad - N), (0, 0)))

    grid = (n_pad // tile_n,)

    y, h = pl.pallas_call(
        ffn_kernel,
        out_shape=(
            jax.ShapeDtypeStruct((n_pad, 1), jnp.float32),   # y_pred
            jax.ShapeDtypeStruct((n_pad, H), jnp.float32),   # h (module layout)
        ),
        grid=grid,
        in_specs=[
            pl.BlockSpec((tile_n, 1), lambda i: (i, 0)),          # x tile
            pl.BlockSpec((3, H), lambda i: (0, 0)),               # packed params (resident)
            pl.BlockSpec(memory_space=pltpu.MemorySpace.SMEM),    # b2 scalar
        ],
        out_specs=(
            pl.BlockSpec((tile_n, 1), lambda i: (i, 0)),
            pl.BlockSpec((tile_n, H), lambda i: (i, 0)),
        ),
        compiler_params=pltpu.CompilerParams(
            dimension_semantics=("parallel",),
            vmem_limit_bytes=_VMEM_LIMIT_BYTES),
    )(xp, wpack, b2)

    if n_pad != N:
        y = y[:N]
        h = h[:N]
    return y, h


ffn_forward_jit = jax.jit(ffn_forward)


# ---------------------------------------------------------------------------
# Deterministic init mimicking nn.Linear's uniform(-1/sqrt(fan_in), ...)
# ---------------------------------------------------------------------------
def init_params(key, hidden_dim):
    k1, k2, k3, k4 = jax.random.split(key, 4)
    bound1 = 1.0 / np.sqrt(1.0)          # fc1: in_features = 1
    bound2 = 1.0 / np.sqrt(hidden_dim)   # fc2: in_features = hidden_dim
    w1 = jax.random.uniform(k1, (hidden_dim, 1), jnp.float32, -bound1, bound1)
    b1 = jax.random.uniform(k2, (hidden_dim,), jnp.float32, -bound1, bound1)
    w2 = jax.random.uniform(k3, (1, hidden_dim), jnp.float32, -bound2, bound2)
    b2 = jax.random.uniform(k4, (1,), jnp.float32, -bound2, bound2)
    return w1, b1, w2, b2


if __name__ == "__main__":
    hidden_dim = 10

    # Same input as the reference script: linspace(-pi, pi, 100).reshape(-1, 1)
    x = jnp.linspace(-jnp.pi, jnp.pi, 100, dtype=jnp.float32).reshape(-1, 1)

    key = jax.random.PRNGKey(0)
    w1, b1, w2, b2 = init_params(key, hidden_dim)

    # Params packed once (per init / param update), not per forward call.
    wpack, b2f = prepare_params(w1, b1, w2, b2)

    y_pred, h = ffn_forward_jit(x, wpack, b2f)
    jax.block_until_ready((y_pred, h))

    # Pure-JAX reference (PyTorch semantics: h = relu(x W1^T + b1), y = h W2^T + b2)
    h_ref = jnp.maximum(x @ w1.T + b1, 0.0)
    y_ref = h_ref @ w2.T + b2
    assert y_pred.shape == (100, 1) and h.shape == (100, hidden_dim)
    assert jnp.allclose(h, h_ref, atol=1e-5), "h mismatch"
    assert jnp.allclose(y_pred, y_ref, atol=1e-5), "y mismatch"

    print("KERNEL_OK")
</pallas_src>

<mosaic_0001>
module attributes {stable_mosaic.version = 11 : i64} {
  func.func @ffn_kernel(%arg0: i32, %arg1: memref<104x1xf32, #tpu.memory_space<vmem>>, %arg2: memref<3x10xf32, #tpu.memory_space<vmem>>, %arg3: memref<1xf32, #tpu.memory_space<smem>>, %arg4: memref<104x1xf32, #tpu.memory_space<vmem>>, %arg5: memref<104x10xf32, #tpu.memory_space<vmem>>) attributes {dimension_semantics = [#tpu.dimension_semantics<parallel>], iteration_bounds = array<i64: 1>, scalar_prefetch = 0 : i64, scratch_operands = 0 : i64, tpu.core_type = #tpu.core_type<tc>, window_params = [{transform_indices = @transform_0, window_bounds = array<i64: 104, 1>}, {pipeline_mode = #tpu.pipeline_mode<synchronous>, transform_indices = @transform_1, window_bounds = array<i64: 3, 10>}, {transform_indices = @transform_2, window_bounds = array<i64: 1>}, {transform_indices = @transform_3, window_bounds = array<i64: 104, 1>}, {transform_indices = @transform_4, window_bounds = array<i64: 104, 10>}]} {
    %c0 = arith.constant 0 : index
    %c0_0 = arith.constant 0 : index
    %0 = vector.load %arg1[%c0, %c0_0] : memref<104x1xf32, #tpu.memory_space<vmem>>, vector<104x1xf32>
    %c0_1 = arith.constant 0 : index
    %c0_2 = arith.constant 0 : index
    %1 = vector.load %arg2[%c0_1, %c0_2] : memref<3x10xf32, #tpu.memory_space<vmem>>, vector<1x10xf32>
    %c1 = arith.constant 1 : index
    %c0_3 = arith.constant 0 : index
    %2 = vector.load %arg2[%c1, %c0_3] : memref<3x10xf32, #tpu.memory_space<vmem>>, vector<1x10xf32>
    %c2 = arith.constant 2 : index
    %c0_4 = arith.constant 0 : index
    %3 = vector.load %arg2[%c2, %c0_4] : memref<3x10xf32, #tpu.memory_space<vmem>>, vector<1x10xf32>
    %4 = vector.broadcast %0 : vector<104x1xf32> to vector<104x10xf32>
    %5 = vector.broadcast %1 : vector<1x10xf32> to vector<104x10xf32>
    %6 = arith.mulf %4, %5 : vector<104x10xf32>
    %7 = vector.broadcast %2 : vector<1x10xf32> to vector<104x10xf32>
    %8 = arith.addf %6, %7 : vector<104x10xf32>
    %cst = arith.constant 0.000000e+00 : f32
    %9 = vector.broadcast %cst : f32 to vector<104x10xf32>
    %10 = arith.maximumf %8, %9 : vector<104x10xf32>
    %c0_5 = arith.constant 0 : index
    %c0_6 = arith.constant 0 : index
    %11 = vector.load %arg5[%c0_5, %c0_6] : memref<104x10xf32, #tpu.memory_space<vmem>>, vector<104x10xf32>
    tpu.vector_store %arg5[%c0_5, %c0_6], %10 {strides = array<i32>} : memref<104x10xf32, #tpu.memory_space<vmem>>, vector<104x10xf32>,
    %12 = vector.broadcast %3 : vector<1x10xf32> to vector<104x10xf32>
    %13 = arith.mulf %10, %12 : vector<104x10xf32>
    %cst_7 = arith.constant dense<0.000000e+00> : vector<104xf32>
    %14 = vector.multi_reduction <add>, %13, %cst_7 [1] : vector<104x10xf32> to vector<104xf32>
    %15 = vector.shape_cast %14 : vector<104xf32> to vector<104x1xf32>
    %c0_8 = arith.constant 0 : index
    %16 = memref.load %arg3[%c0_8] : memref<1xf32, #tpu.memory_space<smem>>
    %17 = vector.broadcast %16 : f32 to vector<104x1xf32>
    %18 = arith.addf %15, %17 : vector<104x1xf32>
    %c0_9 = arith.constant 0 : index
    %c0_10 = arith.constant 0 : index
    %19 = vector.load %arg4[%c0_9, %c0_10] : memref<104x1xf32, #tpu.memory_space<vmem>>, vector<104x1xf32>
    tpu.vector_store %arg4[%c0_9, %c0_10], %18 {strides = array<i32>} : memref<104x1xf32, #tpu.memory_space<vmem>>, vector<104x1xf32>,
    return
  }
  func.func @transform_0(%arg0: i32) -> (i32, i32) {
    %c0_i32 = arith.constant 0 : i32
    %c0_i32_0 = arith.constant 0 : i32
    return %arg0, %c0_i32 : i32, i32
  }
  func.func @transform_1(%arg0: i32) -> (i32, i32) {
    %c0_i32 = arith.constant 0 : i32
    %c0_i32_0 = arith.constant 0 : i32
    %c0_i32_1 = arith.constant 0 : i32
    return %c0_i32, %c0_i32_0 : i32, i32
  }
  func.func @transform_2(%arg0: i32) -> i32 {
    %c0_i32 = arith.constant 0 : i32
    %c0_i32_0 = arith.constant 0 : i32
    return %c0_i32 : i32
  }
  func.func @transform_3(%arg0: i32) -> (i32, i32) {
    %c0_i32 = arith.constant 0 : i32
    %c0_i32_0 = arith.constant 0 : i32
    return %arg0, %c0_i32 : i32, i32
  }
  func.func @transform_4(%arg0: i32) -> (i32, i32) {
    %c0_i32 = arith.constant 0 : i32
    %c0_i32_0 = arith.constant 0 : i32
    return %arg0, %c0_i32 : i32, i32
  }
}

</mosaic_0001>

<bundles_post_ra>
// kernel: ffn_forward.1
= control target key start
LH: loop header
LB: loop body
LE: loop exit
PB: predicated region body
PF: predicated region fallthrough
CT: control target
= control target key end

     0   :  { %v250_v0 = vmov 0   ;;  %vm139_vm0 = vcmask 80896   ;;  %vm221_vm1 = vcmask 7168   ;;  %s510_s0 = inlined_call_operand.vmem [shape: f32[104,1], index: 0, kind: input, shape index: {}]   ;;  %s511_s1 = inlined_call_operand.vmem [shape: f32[3,10], index: 1, kind: input, shape index: {}]   ;;  %s512_s4 = inlined_call_operand.vmem [shape: f32[104,10], index: 4, kind: output, shape index: {1}]   ;;  %s513_s2 = inlined_call_operand.<no memory space> [shape: f32[1], index: 2, kind: input, shape index: {}]   ;;  %s514_s3 = inlined_call_operand.vmem [shape: f32[104,1], index: 3, kind: output, shape index: {0}]  }
   0x1   :  { %245 = vset.pattern.permute.xlu1 %v250_v0  ;;  %244 = vset.pattern.permute.xlu0 %v250_v0  ;;  %v19_v1 = vld [vmem:[%s510_s0 + $0x10] sm:$0xff]  ;;  %v17_v2 = vld [vmem:[%s510_s0] sm:$0xff]  ;;  %v20_v4 = vld [vmem:[%s510_s0 + $0x18] sm:$0xff] }
   0x2   :  { %45 = vperm.xlu1 %245, %v19_v1   ;;  %35 = vperm.xlu0 %244, %v17_v2   ;;  %v21_v3 = vld [vmem:[%s510_s0 + $0x20] sm:$0xff]  ;;  %v18_v5 = vld [vmem:[%s510_s0 + $0x8] sm:$0xff]  ;;  %v24_v7 = vld [vmem:[%s510_s0 + $0x38] sm:$0xff] }
   0x3   :  { %246 = vset.pattern.permute.xlu2 %v250_v0  ;;  %v22_v6 = vld [vmem:[%s510_s0 + $0x28] sm:$0xff]  ;;  %v23_v8 = vld [vmem:[%s510_s0 + $0x30] sm:$0xff]  ;;  %v25_v9 = vld [vmem:[%s510_s0 + $0x40] sm:$0xff] }
   0x4   :  { %55 = vperm.xlu2 %246, %v21_v3   ;;  %v27_v10 = vld [vmem:[%s510_s0 + $0x50] sm:$0xff]  ;;  %v26_v11 = vld [vmem:[%s510_s0 + $0x48] sm:$0xff]  ;;  %v28_v12 = vld [vmem:[%s510_s0 + $0x58] sm:$0xff] }
   0x5   :  { %v29_v13 = vld [vmem:[%s510_s0 + $0x60] sm:$0xff] }
   0x6   :  { %v318_v14 = vld [vmem:[%s511_s1] ss:$0 sm:$0xff]  ;;  %v323_v16 = vld [vmem:[%s511_s1 + $0x1] ss:$0 sm:$0xff]  ;;  %v360_v35 = vld [vmem:[%s511_s1 + $0x2] ss:$0 sm:$0xff] }
   0xa   :  { %50 = vperm.xlu1 %245, %v20_v4   ;;  %40 = vperm.xlu0 %244, %v18_v5  }
   0xc   :  { %60 = vperm.xlu2 %246, %v22_v6  }
  0x12   :  { %70 = vperm.xlu1 %245, %v24_v7   ;;  %65 = vperm.xlu0 %244, %v23_v8  }
  0x14   :  { %75 = vperm.xlu2 %246, %v25_v9  }
  0x1a   :  { %85 = vperm.xlu1 %245, %v27_v10   ;;  %80 = vperm.xlu0 %244, %v26_v11  }
  0x1c   :  { %90 = vperm.xlu2 %246, %v28_v12  }
  0x22   :  { %95 = vperm.xlu0 %244, %v29_v13  }
  0x5e   :  { %v56_v15 = vpop.permute.xlu2 %55 }
  0x5f   :  { %v103_v17 = vmul.f32 %v318_v14, %v56_v15 }
  0x61   :  { %v117_v18 = vadd.f32 %v323_v16, %v103_v17 }
  0x63   :  { %v130_v19 = vmax.f32 %v117_v18, 0.0 }
  0x65   :  { %144 = vst.msk [vmem:[%s512_s4 + $0x20] sm:$0xff] %vm139_vm0, %v130_v19  ;;  %v158_v51 = vmul.f32 %v360_v35, %v130_v19 }
  0x66   :  { %v61_v20 = vpop.permute.xlu2 %60 }
  0x67   :  { %v104_v21 = vmul.f32 %v318_v14, %v61_v20  ;;  %v179_v54 = vsel %vm139_vm0, %v158_v51, 0.0 }
  0x69   :  { %v333_v22 = vadd.f32 %v323_v16, %v104_v21 }
  0x6b   :  { %v131_v23 = vmax.f32 %v333_v22, 0.0 }
  0x6d   :  { %145 = vst.msk [vmem:[%s512_s4 + $0x28] sm:$0xff] %vm139_vm0, %v131_v23  ;;  %v159_v17 = vmul.f32 %v360_v35, %v131_v23 }
  0x6e   :  { %v76_v24 = vpop.permute.xlu2 %75 }
  0x6f   :  { %v107_v25 = vmul.f32 %v318_v14, %v76_v24  ;;  %v182_v23 = vsel %vm139_vm0, %v159_v17, 0.0 }
  0x71   :  { %v344_v26 = vadd.f32 %v323_v16, %v107_v25 }
  0x73   :  { %v134_v27 = vmax.f32 %v344_v26, 0.0 }
  0x74   :  { %v46_v28 = vpop.permute.xlu1 %45  ;;  %v36_v29 = vpop.permute.xlu0 %35 }
  0x75   :  { %v101_v30 = vmul.f32 %v318_v14, %v46_v28  ;;  %v99_v31 = vmul.f32 %v318_v14, %v36_v29  ;;  %148 = vst.msk [vmem:[%s512_s4 + $0x40] sm:$0xff] %vm139_vm0, %v134_v27  ;;  %v162_v29 = vmul.f32 %v360_v35, %v134_v27  ;;  %v207_v27 = vstv %s513_s2 }
  0x76   :  { %v91_v32 = vpop.permute.xlu2 %90 }
  0x77   :  { %v115_v33 = vadd.f32 %v323_v16, %v101_v30  ;;  %v113_v34 = vadd.f32 %v323_v16, %v99_v31  ;;  %v110_v36 = vmul.f32 %v318_v14, %v91_v32  ;;  %v191_v30 = vsel %vm139_vm0, %v162_v29, 0.0 }
  0x79   :  { %v128_v37 = vmax.f32 %v115_v33, 0.0  ;;  %v126_v38 = vmax.f32 %v113_v34, 0.0  ;;  %v364_v39 = vadd.f32 %v323_v16, %v110_v36 }
  0x7b   :  { %142 = vst.msk [vmem:[%s512_s4 + $0x10] sm:$0xff] %vm139_vm0, %v128_v37  ;;  %v154_v40 = vmul.f32 %v360_v35, %v126_v38  ;;  %v137_v41 = vmax.f32 %v364_v39, 0.0  ;;  %v156_v42 = vmul.f32 %v360_v35, %v128_v37 }
  0x7c   :  { %140 = vst.msk [vmem:[%s512_s4] sm:$0xff] %vm139_vm0, %v126_v38  ;;  %v51_v43 = vpop.permute.xlu1 %50  ;;  %v41_v44 = vpop.permute.xlu0 %40 }
  0x7d   :  { %v102_v45 = vmul.f32 %v318_v14, %v51_v43  ;;  %v100_v46 = vmul.f32 %v318_v14, %v41_v44  ;;  %v167_v47 = vsel %vm139_vm0, %v154_v40, 0.0  ;;  %151 = vst.msk [vmem:[%s512_s4 + $0x58] sm:$0xff] %vm139_vm0, %v137_v41  ;;  %v173_v48 = vsel %vm139_vm0, %v156_v42, 0.0 }
  0x7e   :  { %168 = vadd.xlane.f32.xlu1 %v167_v47  ;;  %174 = vadd.xlane.f32.xlu0 %v173_v48 }
  0x7f   :  { %v116_v49 = vadd.f32 %v323_v16, %v102_v45  ;;  %v114_v50 = vadd.f32 %v323_v16, %v100_v46 }
  0x81   :  { %v129_v52 = vmax.f32 %v116_v49, 0.0  ;;  %v127_v53 = vmax.f32 %v114_v50, 0.0 }
  0x83   :  { %143 = vst.msk [vmem:[%s512_s4 + $0x18] sm:$0xff] %vm139_vm0, %v129_v52  ;;  %v155_v55 = vmul.f32 %v360_v35, %v127_v53  ;;  %v157_v63 = vmul.f32 %v360_v35, %v129_v52 }
  0x84   :  { %141 = vst.msk [vmem:[%s512_s4 + $0x8] sm:$0xff] %vm139_vm0, %v127_v53  ;;  %v71_v56 = vpop.permute.xlu1 %70  ;;  %v66_v57 = vpop.permute.xlu0 %65 }
  0x85   :  { %v106_v58 = vmul.f32 %v318_v14, %v71_v56  ;;  %v105_v59 = vmul.f32 %v318_v14, %v66_v57  ;;  %v170_v60 = vsel %vm139_vm0, %v155_v55, 0.0  ;;  %v176_v6 = vsel %vm139_vm0, %v157_v63, 0.0 }
  0x86   :  { %180 = vadd.xlane.f32.xlu1 %v179_v54  ;;  %171 = vadd.xlane.f32.xlu2 %v170_v60 }
  0x87   :  { %v120_v61 = vadd.f32 %v323_v16, %v106_v58  ;;  %v119_v62 = vadd.f32 %v323_v16, %v105_v59 }
  0x89   :  { %v133_v0 = vmax.f32 %v120_v61, 0.0  ;;  %v132_v1 = vmax.f32 %v119_v62, 0.0 }
  0x8b   :  { %147 = vst.msk [vmem:[%s512_s4 + $0x38] sm:$0xff] %vm139_vm0, %v133_v0  ;;  %v161_v2 = vmul.f32 %v360_v35, %v133_v0  ;;  %v160_v3 = vmul.f32 %v360_v35, %v132_v1 }
  0x8c   :  { %146 = vst.msk [vmem:[%s512_s4 + $0x30] sm:$0xff] %vm139_vm0, %v132_v1  ;;  %v86_v4 = vpop.permute.xlu1 %85  ;;  %v81_v5 = vpop.permute.xlu0 %80 }
  0x8d   :  { %v109_v7 = vmul.f32 %v318_v14, %v86_v4  ;;  %v108_v8 = vmul.f32 %v318_v14, %v81_v5  ;;  %v188_v9 = vsel %vm139_vm0, %v161_v2, 0.0  ;;  %v185_v10 = vsel %vm139_vm0, %v160_v3, 0.0 }
  0x8e   :  { %189 = vadd.xlane.f32.xlu1 %v188_v9  ;;  %177 = vadd.xlane.f32.xlu2 %v176_v6 }
  0x8f   :  { %v123_v11 = vadd.f32 %v323_v16, %v109_v7  ;;  %v122_v12 = vadd.f32 %v323_v16, %v108_v8  ;;  %186 = vadd.xlane.f32.xlu0 %v185_v10 }
  0x91   :  { %v136_v13 = vmax.f32 %v123_v11, 0.0  ;;  %v135_v15 = vmax.f32 %v122_v12, 0.0 }
  0x93   :  { %150 = vst.msk [vmem:[%s512_s4 + $0x50] sm:$0xff] %vm139_vm0, %v136_v13  ;;  %v164_v18 = vmul.f32 %v360_v35, %v136_v13  ;;  %v163_v19 = vmul.f32 %v360_v35, %v135_v15 }
  0x94   :  { %149 = vst.msk [vmem:[%s512_s4 + $0x48] sm:$0xff] %vm139_vm0, %v135_v15  ;;  %v96_v20 = vpop.permute.xlu0 %95 }
  0x95   :  { %v111_v21 = vmul.f32 %v318_v14, %v96_v20  ;;  %v197_v22 = vsel %vm139_vm0, %v164_v18, 0.0  ;;  %v194_v24 = vsel %vm139_vm0, %v163_v19, 0.0 }
  0x96   :  { %198 = vadd.xlane.f32.xlu1 %v197_v22  ;;  %183 = vadd.xlane.f32.xlu2 %v182_v23 }
  0x97   :  { %v125_v25 = vadd.f32 %v323_v16, %v111_v21  ;;  %195 = vadd.xlane.f32.xlu0 %v194_v24  ;;  %v165_v16 = vmul.f32 %v360_v35, %v137_v41 }
  0x99   :  { %v138_v28 = vmax.f32 %v125_v25, 0.0  ;;  %v200_v26 = vsel %vm139_vm0, %v165_v16, 0.0 }
  0x9b   :  { %152 = vst.msk [vmem:[%s512_s4 + $0x60] sm:$0xff] %vm139_vm0, %v138_v28  ;;  %v166_v14 = vmul.f32 %v360_v35, %v138_v28 }
  0x9d   :  { %v203_v31 = vsel %vm139_vm0, %v166_v14, 0.0 }
  0x9e   :  { %192 = vadd.xlane.f32.xlu2 %v191_v30 }
  0x9f   :  { %204 = vadd.xlane.f32.xlu0 %v203_v31 }
  0xa6   :  { %201 = vadd.xlane.f32.xlu2 %v200_v26 }
  0xf1   :  { %v169_v32 = vpop.xlane.xlu1 %168  ;;  %v175_v33 = vpop.xlane.xlu0 %174 }
  0xf2   :  { %v208_v34 = vadd.f32 %v207_v27, %v169_v32  ;;  %v210_v36 = vadd.f32 %v207_v27, %v175_v33 }
  0xf4   :  { %222 = vst.msk [vmem:[%s514_s3] sm:$0xff] %vm221_vm1, %v208_v34 }
  0xf5   :  { %224 = vst.msk [vmem:[%s514_s3 + $0x10] sm:$0xff] %vm221_vm1, %v210_v36 }
  0xf9   :  { %v181_v35 = vpop.xlane.xlu1 %180  ;;  %v172_v37 = vpop.xlane.xlu2 %171 }
  0xfa   :  { %v212_v38 = vadd.f32 %v207_v27, %v181_v35  ;;  %v209_v39 = vadd.f32 %v207_v27, %v172_v37 }
  0xfc   :  { %226 = vst.msk [vmem:[%s514_s3 + $0x20] sm:$0xff] %vm221_vm1, %v212_v38 }
  0xfd   :  { %223 = vst.msk [vmem:[%s514_s3 + $0x8] sm:$0xff] %vm221_vm1, %v209_v39 }
 0x101   :  { %v190_v40 = vpop.xlane.xlu1 %189  ;;  %v178_v41 = vpop.xlane.xlu2 %177 }
 0x102   :  { %v215_v42 = vadd.f32 %v207_v27, %v190_v40  ;;  %v211_v43 = vadd.f32 %v207_v27, %v178_v41  ;;  %v187_v44 = vpop.xlane.xlu0 %186 }
 0x103   :  { %v214_v45 = vadd.f32 %v207_v27, %v187_v44 }
 0x104   :  { %229 = vst.msk [vmem:[%s514_s3 + $0x38] sm:$0xff] %vm221_vm1, %v215_v42 }
 0x105   :  { %225 = vst.msk [vmem:[%s514_s3 + $0x18] sm:$0xff] %vm221_vm1, %v211_v43 }
 0x106   :  { %228 = vst.msk [vmem:[%s514_s3 + $0x30] sm:$0xff] %vm221_vm1, %v214_v45 }
 0x109   :  { %v199_v46 = vpop.xlane.xlu1 %198  ;;  %v184_v47 = vpop.xlane.xlu2 %183 }
 0x10a   :  { %v218_v48 = vadd.f32 %v207_v27, %v199_v46  ;;  %v213_v49 = vadd.f32 %v207_v27, %v184_v47  ;;  %v196_v50 = vpop.xlane.xlu0 %195 }
 0x10b   :  { %v217_v51 = vadd.f32 %v207_v27, %v196_v50 }
 0x10c   :  { %232 = vst.msk [vmem:[%s514_s3 + $0x50] sm:$0xff] %vm221_vm1, %v218_v48 }
 0x10d   :  { %227 = vst.msk [vmem:[%s514_s3 + $0x28] sm:$0xff] %vm221_vm1, %v213_v49 }
 0x10e   :  { %231 = vst.msk [vmem:[%s514_s3 + $0x48] sm:$0xff] %vm221_vm1, %v217_v51 }
 0x111   :  { %v193_v52 = vpop.xlane.xlu2 %192 }
 0x112   :  { %v216_v53 = vadd.f32 %v207_v27, %v193_v52  ;;  %v205_v54 = vpop.xlane.xlu0 %204 }
 0x113   :  { %v220_v55 = vadd.f32 %v207_v27, %v205_v54 }
 0x114   :  { %230 = vst.msk [vmem:[%s514_s3 + $0x40] sm:$0xff] %vm221_vm1, %v216_v53 }
 0x115   :  { %234 = vst.msk [vmem:[%s514_s3 + $0x60] sm:$0xff] %vm221_vm1, %v220_v55 }
 0x119   :  { %v202_v56 = vpop.xlane.xlu2 %201 }
 0x11a   :  { %v219_v57 = vadd.f32 %v207_v27, %v202_v56 }
 0x11c   :  { %233 = vst.msk [vmem:[%s514_s3 + $0x58] sm:$0xff] %vm221_vm1, %v219_v57 }

</bundles_post_ra>
